<compile_context>
chip_gen: v5e
topology: v5e:2x2
jax: 0.10.0
libtpu: 0.0.40
codegen_flags: <defaults>
</compile_context>

<pallas_src>
import jax
import jax.numpy as jnp
from jax.experimental import pallas as pl
from jax.experimental.pallas import tpu as pltpu

IN_DIM = 28 * 28   # 784
HID_DIM = 120
OUT_DIM = 10

IN_PAD = 896       # 7 * 128 (lane-dense feature axis)
HID_PAD = 128
OUT_PAD = 128

NEG_BIG = -1e30    # bias for padded class lanes -> exp() underflows to 0


def _round_up(x, m):
    return ((x + m - 1) // m) * m


def netfull_kernel(x_ref, w1_ref, b1_ref, w2_ref, b2_ref, o_ref):
    # Hidden layer: tanh(x @ W1 + b1). bf16 MXU matmul, f32 accumulation,
    # tanh on the f32 accumulator (EUP).
    h = jnp.tanh(
        jnp.dot(x_ref[...], w1_ref[...], preferred_element_type=jnp.float32)
        + b1_ref[...]
    )
    # Output layer: logits = h @ W2 + b2. Padded class lanes get a -1e30 bias
    # (set in the wrapper) so they contribute nothing to the softmax.
    logits = (
        jnp.dot(h.astype(jnp.bfloat16), w2_ref[...],
                preferred_element_type=jnp.float32)
        + b2_ref[...]
    )
    # Numerically stable log_softmax over the class axis (f32 throughout).
    m = jnp.max(logits, axis=-1, keepdims=True)
    shifted = logits - m
    lse = jnp.log(jnp.sum(jnp.exp(shifted), axis=-1, keepdims=True))
    o_ref[...] = (shifted - lse).astype(o_ref.dtype)


def netfull_forward(x, w1, b1, w2, b2, *, tm_max=1024):
    """x: any shape with 784 trailing elements per sample (e.g. [N,1,28,28]).

    w1: (120, 784), b1: (120,), w2: (10, 120), b2: (10,)  (PyTorch layout).
    Returns (N, 10) f32 log-probabilities.
    """
    x2d = x.reshape(-1, IN_DIM)
    n = x2d.shape[0]

    # Batch tile: multiple of 16 (bf16 sublane packing), capped so the
    # double-buffered (TM, 896) bf16 x tile stays well inside scoped VMEM on
    # every generation (TM=1024 -> ~3.5 MiB of x buffers + ~1 MiB out).
    tm = min(tm_max, _round_up(n, 16))
    n_pad = _round_up(n, tm)

    # Zero-pad rows (batch) and the feature axis, cast to bf16 for the MXU.
    x_p = jnp.zeros((n_pad, IN_PAD), jnp.bfloat16)
    x_p = x_p.at[:n, :IN_DIM].set(x2d.astype(jnp.bfloat16))

    # Pre-transpose PyTorch (out,in) weights to (in,out) and lane-pad.
    w1_p = jnp.zeros((IN_PAD, HID_PAD), jnp.bfloat16)
    w1_p = w1_p.at[:IN_DIM, :HID_DIM].set(w1.T.astype(jnp.bfloat16))
    b1_p = jnp.zeros((1, HID_PAD), jnp.float32).at[0, :HID_DIM].set(b1)

    w2_p = jnp.zeros((HID_PAD, OUT_PAD), jnp.bfloat16)
    w2_p = w2_p.at[:HID_DIM, :OUT_DIM].set(w2.T.astype(jnp.bfloat16))
    b2_p = jnp.full((1, OUT_PAD), NEG_BIG, jnp.float32).at[0, :OUT_DIM].set(b2)

    grid = (n_pad // tm,)

    cost = pl.CostEstimate(
        flops=2 * n_pad * (IN_PAD * HID_PAD + HID_PAD * OUT_PAD),
        transcendentals=n_pad * (HID_PAD + OUT_PAD + 1),   # tanh + exp + log
        bytes_accessed=n_pad * (IN_PAD * 2 + OUT_PAD * 4)
        + (IN_PAD * HID_PAD + HID_PAD * OUT_PAD) * 2
        + (HID_PAD + OUT_PAD) * 4,
    )

    out = pl.pallas_call(
        netfull_kernel,
        out_shape=jax.ShapeDtypeStruct((n_pad, OUT_PAD), jnp.float32),
        grid=grid,
        in_specs=[
            pl.BlockSpec((tm, IN_PAD), lambda i: (i, 0)),       # streamed
            pl.BlockSpec((IN_PAD, HID_PAD), lambda i: (0, 0)),  # resident
            pl.BlockSpec((1, HID_PAD), lambda i: (0, 0)),       # resident
            pl.BlockSpec((HID_PAD, OUT_PAD), lambda i: (0, 0)), # resident
            pl.BlockSpec((1, OUT_PAD), lambda i: (0, 0)),       # resident
        ],
        out_specs=pl.BlockSpec((tm, OUT_PAD), lambda i: (i, 0)),
        compiler_params=pltpu.CompilerParams(
            dimension_semantics=("parallel",),
        ),
        cost_estimate=cost,
    )(x_p, w1_p, b1_p, w2_p, b2_p)

    return out[:n, :OUT_DIM]


def _reference(x, w1, b1, w2, b2):
    x2d = x.reshape(-1, IN_DIM).astype(jnp.float32)
    h = jnp.tanh(x2d @ w1.T + b1)
    logits = h @ w2.T + b2
    return jax.nn.log_softmax(logits, axis=1)


if __name__ == "__main__":
    key = jax.random.PRNGKey(0)
    kx, kw1, kb1, kw2, kb2 = jax.random.split(key, 5)

    batch = 8
    # MNIST-style input (NCHW); forward flattens it to [batch, 784].
    x = jax.random.normal(kx, (batch, 1, 28, 28), dtype=jnp.float32)

    # Deterministic parameter init matching nn.Linear shapes (out, in) / (out,)
    bound1 = 1.0 / (IN_DIM ** 0.5)
    bound2 = 1.0 / (HID_DIM ** 0.5)
    w1 = jax.random.uniform(kw1, (HID_DIM, IN_DIM), jnp.float32, -bound1, bound1)
    b1 = jax.random.uniform(kb1, (HID_DIM,), jnp.float32, -bound1, bound1)
    w2 = jax.random.uniform(kw2, (OUT_DIM, HID_DIM), jnp.float32, -bound2, bound2)
    b2 = jax.random.uniform(kb2, (OUT_DIM,), jnp.float32, -bound2, bound2)

    out = netfull_forward(x, w1, b1, w2, b2)
    jax.block_until_ready(out)

    ref = _reference(x, w1, b1, w2, b2)
    assert out.shape == (batch, OUT_DIM)
    # bf16 matmul inputs -> loosened tolerance vs the f32 reference.
    assert jnp.allclose(out, ref, atol=5e-2, rtol=5e-2), (
        "mismatch vs reference, max abs diff = "
        f"{float(jnp.max(jnp.abs(out - ref)))}"
    )

    print("KERNEL_OK")
</pallas_src>

<mosaic_0001>
module attributes {stable_mosaic.version = 11 : i64} {
  func.func @netfull_kernel(%arg0: i32, %arg1: memref<16x896xbf16, #tpu.memory_space<vmem>>, %arg2: memref<896x128xbf16, #tpu.memory_space<vmem>>, %arg3: memref<1x128xf32, #tpu.memory_space<vmem>>, %arg4: memref<128x128xbf16, #tpu.memory_space<vmem>>, %arg5: memref<1x128xf32, #tpu.memory_space<vmem>>, %arg6: memref<16x128xf32, #tpu.memory_space<vmem>>) attributes {dimension_semantics = [#tpu.dimension_semantics<parallel>], iteration_bounds = array<i64: 1>, scalar_prefetch = 0 : i64, scratch_operands = 0 : i64, tpu.core_type = #tpu.core_type<tc>, window_params = [{transform_indices = @transform_0, window_bounds = array<i64: 16, 896>}, {pipeline_mode = #tpu.pipeline_mode<synchronous>, transform_indices = @transform_1, window_bounds = array<i64: 896, 128>}, {pipeline_mode = #tpu.pipeline_mode<synchronous>, transform_indices = @transform_2, window_bounds = array<i64: 1, 128>}, {pipeline_mode = #tpu.pipeline_mode<synchronous>, transform_indices = @transform_3, window_bounds = array<i64: 128, 128>}, {pipeline_mode = #tpu.pipeline_mode<synchronous>, transform_indices = @transform_4, window_bounds = array<i64: 1, 128>}, {transform_indices = @transform_5, window_bounds = array<i64: 16, 128>}]} {
    %c0 = arith.constant 0 : index
    %c0_0 = arith.constant 0 : index
    %0 = vector.load %arg1[%c0, %c0_0] : memref<16x896xbf16, #tpu.memory_space<vmem>>, vector<16x896xbf16>
    %c0_1 = arith.constant 0 : index
    %c0_2 = arith.constant 0 : index
    %1 = vector.load %arg2[%c0_1, %c0_2] : memref<896x128xbf16, #tpu.memory_space<vmem>>, vector<896x128xbf16>
    %cst = arith.constant dense<0.000000e+00> : vector<16x128xf32>
    %2 = tpu.matmul %0, %1, %cst {dimension_numbers = #tpu.dot_dimension_numbers<[1], [0], [0], [1], [0, 0, 1, 1], [], []>} : vector<16x896xbf16>, vector<896x128xbf16>, vector<16x128xf32> -> vector<16x128xf32>
    %c0_3 = arith.constant 0 : index
    %c0_4 = arith.constant 0 : index
    %3 = vector.load %arg3[%c0_3, %c0_4] : memref<1x128xf32, #tpu.memory_space<vmem>>, vector<1x128xf32>
    %4 = vector.broadcast %3 : vector<1x128xf32> to vector<16x128xf32>
    %5 = arith.addf %2, %4 : vector<16x128xf32>
    %6 = math.tanh %5 : vector<16x128xf32>
    %7 = arith.truncf %6 : vector<16x128xf32> to vector<16x128xbf16>
    %c0_5 = arith.constant 0 : index
    %c0_6 = arith.constant 0 : index
    %8 = vector.load %arg4[%c0_5, %c0_6] : memref<128x128xbf16, #tpu.memory_space<vmem>>, vector<128x128xbf16>
    %cst_7 = arith.constant dense<0.000000e+00> : vector<16x128xf32>
    %9 = tpu.matmul %7, %8, %cst_7 {dimension_numbers = #tpu.dot_dimension_numbers<[1], [0], [0], [1], [0, 0, 1, 1], [], []>} : vector<16x128xbf16>, vector<128x128xbf16>, vector<16x128xf32> -> vector<16x128xf32>
    %c0_8 = arith.constant 0 : index
    %c0_9 = arith.constant 0 : index
    %10 = vector.load %arg5[%c0_8, %c0_9] : memref<1x128xf32, #tpu.memory_space<vmem>>, vector<1x128xf32>
    %11 = vector.broadcast %10 : vector<1x128xf32> to vector<16x128xf32>
    %12 = arith.addf %9, %11 : vector<16x128xf32>
    %cst_10 = arith.constant dense<0xFF800000> : vector<16xf32>
    %13 = vector.multi_reduction <maximumf>, %12, %cst_10 [1] : vector<16x128xf32> to vector<16xf32>
    %14 = vector.shape_cast %13 : vector<16xf32> to vector<16x1xf32>
    %15 = vector.broadcast %14 : vector<16x1xf32> to vector<16x128xf32>
    %16 = arith.subf %12, %15 : vector<16x128xf32>
    %17 = math.exp %16 : vector<16x128xf32>
    %cst_11 = arith.constant dense<0.000000e+00> : vector<16xf32>
    %18 = vector.multi_reduction <add>, %17, %cst_11 [1] : vector<16x128xf32> to vector<16xf32>
    %19 = vector.shape_cast %18 : vector<16xf32> to vector<16x1xf32>
    %20 = math.log %19 : vector<16x1xf32>
    %21 = vector.broadcast %20 : vector<16x1xf32> to vector<16x128xf32>
    %22 = arith.subf %16, %21 : vector<16x128xf32>
    %c0_12 = arith.constant 0 : index
    %c0_13 = arith.constant 0 : index
    %23 = vector.load %arg6[%c0_12, %c0_13] : memref<16x128xf32, #tpu.memory_space<vmem>>, vector<16x128xf32>
    tpu.vector_store %arg6[%c0_12, %c0_13], %22 {strides = array<i32>} : memref<16x128xf32, #tpu.memory_space<vmem>>, vector<16x128xf32>,
    return
  }
  func.func @transform_0(%arg0: i32) -> (i32, i32) {
    %c0_i32 = arith.constant 0 : i32
    %c0_i32_0 = arith.constant 0 : i32
    return %arg0, %c0_i32 : i32, i32
  }
  func.func @transform_1(%arg0: i32) -> (i32, i32) {
    %c0_i32 = arith.constant 0 : i32
    %c0_i32_0 = arith.constant 0 : i32
    %c0_i32_1 = arith.constant 0 : i32
    return %c0_i32, %c0_i32_0 : i32, i32
  }
  func.func @transform_2(%arg0: i32) -> (i32, i32) {
    %c0_i32 = arith.constant 0 : i32
    %c0_i32_0 = arith.constant 0 : i32
    %c0_i32_1 = arith.constant 0 : i32
    return %c0_i32, %c0_i32_0 : i32, i32
  }
  func.func @transform_3(%arg0: i32) -> (i32, i32) {
    %c0_i32 = arith.constant 0 : i32
    %c0_i32_0 = arith.constant 0 : i32
    %c0_i32_1 = arith.constant 0 : i32
    return %c0_i32, %c0_i32_0 : i32, i32
  }
  func.func @transform_4(%arg0: i32) -> (i32, i32) {
    %c0_i32 = arith.constant 0 : i32
    %c0_i32_0 = arith.constant 0 : i32
    %c0_i32_1 = arith.constant 0 : i32
    return %c0_i32, %c0_i32_0 : i32, i32
  }
  func.func @transform_5(%arg0: i32) -> (i32, i32) {
    %c0_i32 = arith.constant 0 : i32
    %c0_i32_0 = arith.constant 0 : i32
    return %arg0, %c0_i32 : i32, i32
  }
}

</mosaic_0001>

<bundles_post_ra>
// kernel: tpu_custom_call.1
= control target key start
LH: loop header
LB: loop body
LE: loop exit
PB: predicated region body
PF: predicated region fallthrough
CT: control target
= control target key end

     0   :  { %10 = vsyncpa [#allocation3], 0  ;;  %s1328_s0 = inlined_call_operand.hbm [shape: bf16[16,896], index: 0, kind: input, shape index: {}]   ;;  %s1329_s1 = inlined_call_operand.hbm [shape: bf16[896,128], index: 1, kind: input, shape index: {}]   ;;  %s1330_s2 = inlined_call_operand.vmem [shape: f32[1,128], index: 2, kind: input, shape index: {}]   ;;  %s1331_s3 = inlined_call_operand.hbm [shape: bf16[128,128], index: 3, kind: input, shape index: {}]   ;;  %s1332_s4 = inlined_call_operand.vmem [shape: f32[1,128], index: 4, kind: input, shape index: {}]   ;;  %s1333_s5 = inlined_call_operand.hbm [shape: f32[16,128], index: 5, kind: output, shape index: {}]  }
   0x1   :  { %11 = vsyncpa [#allocation6], 0  ;;  %s30_s20 = sshll.u32 %s1329_s1, 4  ;;  %s31_s20 = int_to_ptr.hbm [resolvable:$true] %s30_s20 }
   0x2   :  { %12 = vsyncpa [#allocation4], 0  ;;  %s1270_s21 = smov [#allocation5]   ;;  %s17_s25 = sshll.u32 %s1328_s0, 4  ;;  %s18_s25 = int_to_ptr.hbm [resolvable:$true] %s17_s25 }
   0x3   :  { %s32_s22 = sshll.u32 %s1270_s21, 4  ;;  %s1271_s26 = smov 64   ;;  %s33_s22 = int_to_ptr.vmem [resolvable:$true] %s32_s22 }
   0x4   :  { %s1272_s27 = smov 4   ;;  %s1273_s28 = smov [#allocation2]  }
   0x5   :  { %38 = dma.hbm_to_vmem [thread:$0]  %s31_s20, 7168, %s33_s22, [#allocation6], %s1271_s26, %s1271_s26, %s1272_s27  }
   0x6   :  { %s19_s29 = sshll.u32 %s1273_s28, 4  ;;  %s1274_s30 = smov 448   ;;  %s20_s29 = int_to_ptr.vmem [resolvable:$true] %s19_s29 }
   0x7   :  { %s1275_s6 = smov 28   ;;  %s45_s8 = sshll.u32 %s1331_s3, 4  ;;  %s46_s8 = int_to_ptr.hbm [resolvable:$true] %s45_s8 }
   0x8   :  { %25 = dma.hbm_to_vmem [thread:$0]  %s18_s25, 896, %s20_s29, [#allocation3], %s1274_s30, %s1274_s30, %s1275_s6  }
   0x9   :  { %s1276_s9 = smov [#allocation7]  }
   0xa   :  { %s47_s10 = sshll.u32 %s1276_s9, 4  ;;  %s48_s10 = int_to_ptr.vmem [resolvable:$true] %s47_s10 }
   0xb   :  { %53 = dma.hbm_to_vmem [thread:$0]  %s46_s8, 1024, %s48_s10, [#allocation6], %s1271_s26, %s1271_s26, %s1272_s27  }
   0xc   :  { %1264 = dma.done.wait [#allocation3], 896  }
   0xd   :  { %1265 = vsyncadd [#allocation3], 4294966400 }
   0xe   :  { %1266 = dma.done.wait [#allocation6], 8192  }
   0xf   :  { %1267 = vsyncadd [#allocation6], 4294959104  ;;  %v1087_v0 = vld [vmem:[#allocation5 + $0x38] sm:$0xff]  ;;  %v1086_v3 = vld [vmem:[#allocation5 + $0x30] sm:$0xff]  ;;  %s775_s15 = sshll.u32 %s1333_s5, 4  ;;  %s1278_s16 = smov 128   ;;  %s776_s15 = int_to_ptr.hbm [resolvable:$true] %s775_s15 }
  0x10   :  { %v1095_v1 = vld [vmem:[#allocation5 + $0x78] sm:$0xff]  ;;  %564 = vmatpush.bf16.msra.mxu0 %v1087_v0  ;;  %v1094_v4 = vld [vmem:[#allocation5 + $0x70] sm:$0xff]  ;;  %v1085_v8 = vld [vmem:[#allocation5 + $0x28] sm:$0xff]  ;;  %s1279_s17 = smov 8  }
  0x11   :  { %v1103_v2 = vld [vmem:[#allocation5 + $0xb8] sm:$0xff]  ;;  %578 = vmatpush.bf16.msra.mxu1 %v1095_v1  ;;  %v1102_v6 = vld [vmem:[#allocation5 + $0xb0] sm:$0xff]  ;;  %v1093_v9 = vld [vmem:[#allocation5 + $0x68] sm:$0xff] }
  0x12   :  { %v1111_v5 = vld [vmem:[#allocation5 + $0xf8] sm:$0xff]  ;;  %592 = vmatpush.bf16.msra.mxu2 %v1103_v2  ;;  %v1110_v7 = vld [vmem:[#allocation5 + $0xf0] sm:$0xff]  ;;  %v1101_v10 = vld [vmem:[#allocation5 + $0xa8] sm:$0xff] }
  0x13   :  { %606 = vmatpush.bf16.msra.mxu3 %v1111_v5  ;;  %v1109_v11 = vld [vmem:[#allocation5 + $0xe8] sm:$0xff]  ;;  %v1084_v12 = vld [vmem:[#allocation5 + $0x20] sm:$0xff]  ;;  %v1083_v16 = vld [vmem:[#allocation5 + $0x18] sm:$0xff] }
  0x14   :  { %565 = vmatpush.bf16.msra.mxu0 %v1086_v3  ;;  %v1092_v13 = vld [vmem:[#allocation5 + $0x60] sm:$0xff]  ;;  %v1091_v17 = vld [vmem:[#allocation5 + $0x58] sm:$0xff]  ;;  %v1082_v20 = vld [vmem:[#allocation5 + $0x10] sm:$0xff] }
  0x15   :  { %579 = vmatpush.bf16.msra.mxu1 %v1094_v4  ;;  %v1100_v14 = vld [vmem:[#allocation5 + $0xa0] sm:$0xff]  ;;  %v1099_v18 = vld [vmem:[#allocation5 + $0x98] sm:$0xff]  ;;  %v1090_v21 = vld [vmem:[#allocation5 + $0x50] sm:$0xff] }
  0x16   :  { %593 = vmatpush.bf16.msra.mxu2 %v1102_v6  ;;  %v1108_v15 = vld [vmem:[#allocation5 + $0xe0] sm:$0xff]  ;;  %v1107_v19 = vld [vmem:[#allocation5 + $0xd8] sm:$0xff]  ;;  %v1098_v22 = vld [vmem:[#allocation5 + $0x90] sm:$0xff] }
  0x17   :  { %607 = vmatpush.bf16.msra.mxu3 %v1110_v7  ;;  %v1106_v23 = vld [vmem:[#allocation5 + $0xd0] sm:$0xff]  ;;  %v1081_v24 = vld [vmem:[#allocation5 + $0x8] sm:$0xff]  ;;  %v1080_v27 = vld [vmem:[#allocation5] sm:$0xff] }
  0x18   :  { %566 = vmatpush.bf16.msra.mxu0 %v1085_v8  ;;  %v1089_v25 = vld [vmem:[#allocation5 + $0x48] sm:$0xff]  ;;  %v1088_v29 = vld [vmem:[#allocation5 + $0x40] sm:$0xff]  ;;  %v1119_v31 = vld [vmem:[#allocation5 + $0x138] sm:$0xff] }
  0x19   :  { %580 = vmatpush.bf16.msra.mxu1 %v1093_v9  ;;  %v1097_v26 = vld [vmem:[#allocation5 + $0x88] sm:$0xff]  ;;  %v1096_v30 = vld [vmem:[#allocation5 + $0x80] sm:$0xff]  ;;  %v799_v32 = vld [vmem:[#allocation2 + $0x8] sm:$0xf] }
  0x1a   :  { %594 = vmatpush.bf16.msra.mxu2 %v1101_v10  ;;  %v1105_v28 = vld [vmem:[#allocation5 + $0xc8] sm:$0xff]  ;;  %v1076_v34 = vld [vmem:[#allocation2 + $0x18] sm:$0xf0]  ;;  %v1127_v38 = vld [vmem:[#allocation5 + $0x178] sm:$0xff] }
  0x1b   :  { %608 = vmatpush.bf16.msra.mxu3 %v1109_v11  ;;  %v791_v33 = vld [vmem:[#allocation2] sm:$0xf]  ;;  %v1077_v35 = vld [vmem:[#allocation2 + $0x20] sm:$0xf0]  ;;  %v1135_v39 = vld [vmem:[#allocation5 + $0x1b8] sm:$0xff] }
  0x1c   :  { %567 = vmatpush.bf16.msra.mxu0 %v1084_v12  ;;  %v1073_v36 = vld [vmem:[#allocation2 + $0x4] sm:$0xf]  ;;  %v793_v37 = vld [vmem:[#allocation2 + $0x1c] sm:$0xf0]  ;;  %v1104_v40 = vld [vmem:[#allocation5 + $0xc0] sm:$0xff]  ;;  %v792_v41 = vor.u32 %v1076_v34, %v791_v33  ;;  %v800_v42 = vor.u32 %v1077_v35, %v799_v32 }
  0x1d   :  { %581 = vmatpush.bf16.msra.mxu1 %v1092_v13  ;;  %v1074_v43 = vld [vmem:[#allocation2 + $0xc] sm:$0xf]  ;;  %v801_v44 = vld [vmem:[#allocation2 + $0x24] sm:$0xf0]  ;;  %v796_v45 = vor.u32 %v1073_v36, %v793_v37  ;;  %v1117_v50 = vld [vmem:[#allocation5 + $0x128] sm:$0xff] }
  0x1e   :  { %595 = vmatpush.bf16.msra.mxu2 %v1100_v14  ;;  %v1118_v46 = vld [vmem:[#allocation5 + $0x130] sm:$0xff]  ;;  %v804_v49 = vor.u32 %v1074_v43, %v801_v44  ;;  %v1125_v51 = vld [vmem:[#allocation5 + $0x168] sm:$0xff]  ;;  %v1116_v53 = vld [vmem:[#allocation5 + $0x120] sm:$0xff] }
  0x1f   :  { %609 = vmatpush.bf16.msra.mxu3 %v1108_v15  ;;  %v1126_v47 = vld [vmem:[#allocation5 + $0x170] sm:$0xff]  ;;  %v1133_v52 = vld [vmem:[#allocation5 + $0x1a8] sm:$0xff]  ;;  %v1124_v54 = vld [vmem:[#allocation5 + $0x160] sm:$0xff] }
  0x20   :  { %568 = vmatpush.bf16.msra.mxu0 %v1083_v16  ;;  %v1134_v48 = vld [vmem:[#allocation5 + $0x1b0] sm:$0xff]  ;;  %v1132_v55 = vld [vmem:[#allocation5 + $0x1a0] sm:$0xff]  ;;  %v1115_v56 = vld [vmem:[#allocation5 + $0x118] sm:$0xff] }
  0x21   :  { %582 = vmatpush.bf16.msra.mxu1 %v1091_v17  ;;  %v1123_v57 = vld [vmem:[#allocation5 + $0x158] sm:$0xff]  ;;  %v1114_v59 = vld [vmem:[#allocation5 + $0x110] sm:$0xff]  ;;  %v1113_v62 = vld [vmem:[#allocation5 + $0x108] sm:$0xff] }
  0x22   :  { %596 = vmatpush.bf16.msra.mxu2 %v1099_v18  ;;  %v1131_v58 = vld [vmem:[#allocation5 + $0x198] sm:$0xff]  ;;  %v1122_v60 = vld [vmem:[#allocation5 + $0x150] sm:$0xff]  ;;  %v1121_v63 = vld [vmem:[#allocation5 + $0x148] sm:$0xff] }
  0x23   :  { %610 = vmatpush.bf16.msra.mxu3 %v1107_v19  ;;  %v1130_v61 = vld [vmem:[#allocation5 + $0x190] sm:$0xff]  ;;  %v1129_v0 = vld [vmem:[#allocation5 + $0x188] sm:$0xff]  ;;  %v1112_v1 = vld [vmem:[#allocation5 + $0x100] sm:$0xff] }
  0x24   :  { %569 = vmatpush.bf16.msra.mxu0 %v1082_v20  ;;  %v1120_v2 = vld [vmem:[#allocation5 + $0x140] sm:$0xff]  ;;  %v807_v4 = vld [vmem:[#allocation2 + $0x10] sm:$0xf]  ;;  %v1078_v5 = vld [vmem:[#allocation2 + $0x28] sm:$0xf0] }
  0x25   :  { %583 = vmatpush.bf16.msra.mxu1 %v1090_v21  ;;  %v1128_v3 = vld [vmem:[#allocation5 + $0x180] sm:$0xff]  ;;  %v1075_v6 = vld [vmem:[#allocation2 + $0x14] sm:$0xf]  ;;  %v809_v7 = vld [vmem:[#allocation2 + $0x2c] sm:$0xf0]  ;;  %v808_v10 = vor.u32 %v1078_v5, %v807_v4 }
  0x26   :  { %597 = vmatpush.bf16.msra.mxu2 %v1098_v22  ;;  %v815_v8 = vld [vmem:[#allocation2 + $0x18] sm:$0xf]  ;;  %v1079_v9 = vld [vmem:[#allocation2 + $0x30] sm:$0xf0]  ;;  %v812_v11 = vor.u32 %v1075_v6, %v809_v7  ;;  %v1142_v14 = vld [vmem:[#allocation7 + $0x30] sm:$0xff] }
  0x27   :  { %611 = vmatpush.bf16.msra.mxu3 %v1106_v23  ;;  %v816_v12 = vor.u32 %v1079_v9, %v815_v8  ;;  %v1143_v13 = vld [vmem:[#allocation7 + $0x38] sm:$0xff]  ;;  %v1141_v15 = vld [vmem:[#allocation7 + $0x28] sm:$0xff]  ;;  %v1140_v16 = vld [vmem:[#allocation7 + $0x20] sm:$0xff] }
  0x28   :  { %570 = vmatpush.bf16.msra.mxu0 %v1081_v24  ;;  %v1139_v17 = vld [vmem:[#allocation7 + $0x18] sm:$0xff]  ;;  %v1138_v19 = vld [vmem:[#allocation7 + $0x10] sm:$0xff]  ;;  %v1137_v21 = vld [vmem:[#allocation7 + $0x8] sm:$0xff] }
  0x29   :  { %584 = vmatpush.bf16.msra.mxu1 %v1089_v25  ;;  %v1136_v22 = vld [vmem:[#allocation7] sm:$0xff]  ;;  %v1154_v23 = vld [vmem:[%s1330_s2] ss:$0 sm:$0xff] }
  0x2a   :  { %598 = vmatpush.bf16.msra.mxu2 %v1097_v26 }
  0x2b   :  { %612 = vmatpush.bf16.msra.mxu3 %v1105_v28 }
  0x2c   :  { %571 = vmatpush.bf16.msra.mxu0 %v1080_v27 }
  0x2d   :  { %585 = vmatpush.bf16.msra.mxu1 %v1088_v29 }
  0x2e   :  { %599 = vmatpush.bf16.msra.mxu2 %v1096_v30 }
  0x2f   :  { %613 = vmatpush.bf16.msra.mxu3 %v1104_v40  ;;  %572 = vmatmul.bf16.vlgmr.msra.gmra.mxu0 %v792_v41 }
  0x30   :  { %620 = vmatpush.bf16.msrb.mxu0 %v1119_v31  ;;  %586 = vmatmul.bf16.vlgmr.msra.gmra.mxu1 %v796_v45 }
  0x31   :  { %634 = vmatpush.bf16.msrb.mxu1 %v1127_v38  ;;  %600 = vmatmul.bf16.vlgmr.msra.gmra.mxu2 %v800_v42 }
  0x32   :  { %648 = vmatpush.bf16.msrb.mxu2 %v1135_v39  ;;  %614 = vmatmul.bf16.vlgmr.msra.gmra.mxu3 %v804_v49 }
  0x33   :  { %733 = vmatpush.bf16.msrb.mxu3 %v1143_v13 }
  0x34   :  { %621 = vmatpush.bf16.msrb.mxu0 %v1118_v46 }
  0x35   :  { %635 = vmatpush.bf16.msrb.mxu1 %v1126_v47 }
  0x36   :  { %649 = vmatpush.bf16.msrb.mxu2 %v1134_v48 }
  0x37   :  { %734 = vmatpush.bf16.msrb.mxu3 %v1142_v14 }
  0x38   :  { %622 = vmatpush.bf16.msrb.mxu0 %v1117_v50 }
  0x39   :  { %636 = vmatpush.bf16.msrb.mxu1 %v1125_v51 }
  0x3a   :  { %650 = vmatpush.bf16.msrb.mxu2 %v1133_v52 }
  0x3b   :  { %735 = vmatpush.bf16.msrb.mxu3 %v1141_v15 }
  0x3c   :  { %623 = vmatpush.bf16.msrb.mxu0 %v1116_v53  ;;  %v1155_v53 = vld [vmem:[%s1332_s4] ss:$0 sm:$0xff]  ;;  %s1277_s4 = smov [#allocation8]  }
  0x3d   :  { %637 = vmatpush.bf16.msrb.mxu1 %v1124_v54  ;;  %s773_s12 = sshll.u32 %s1277_s4, 4  ;;  %s774_s12 = int_to_ptr.vmem [resolvable:$true] %s773_s12 }
  0x3e   :  { %651 = vmatpush.bf16.msrb.mxu2 %v1132_v55 }
  0x3f   :  { %736 = vmatpush.bf16.msrb.mxu3 %v1140_v16 }
  0x40   :  { %624 = vmatpush.bf16.msrb.mxu0 %v1115_v56 }
  0x41   :  { %638 = vmatpush.bf16.msrb.mxu1 %v1123_v57 }
  0x42   :  { %652 = vmatpush.bf16.msrb.mxu2 %v1131_v58 }
  0x43   :  { %737 = vmatpush.bf16.msrb.mxu3 %v1139_v17 }
  0x44   :  { %625 = vmatpush.bf16.msrb.mxu0 %v1114_v59 }
  0x45   :  { %639 = vmatpush.bf16.msrb.mxu1 %v1122_v60 }
  0x46   :  { %653 = vmatpush.bf16.msrb.mxu2 %v1130_v61 }
  0x47   :  { %738 = vmatpush.bf16.msrb.mxu3 %v1138_v19 }
  0x48   :  { %626 = vmatpush.bf16.msrb.mxu0 %v1113_v62 }
  0x49   :  { %640 = vmatpush.bf16.msrb.mxu1 %v1121_v63 }
  0x4a   :  { %654 = vmatpush.bf16.msrb.mxu2 %v1129_v0 }
  0x4b   :  { %739 = vmatpush.bf16.msrb.mxu3 %v1137_v21 }
  0x4c   :  { %627 = vmatpush.bf16.msrb.mxu0 %v1112_v1 }
  0x4d   :  { %641 = vmatpush.bf16.msrb.mxu1 %v1120_v2 }
  0x4e   :  { %655 = vmatpush.bf16.msrb.mxu2 %v1128_v3 }
  0x4f   :  { %628 = vmatmul.bf16.vlgmr.msrb.gmra.mxu0 %v808_v10  ;;  %740 = vmatpush.bf16.msrb.mxu3 %v1136_v22 }
  0x50   :  { %642 = vmatmul.bf16.vlgmr.msrb.gmra.mxu1 %v812_v11 }
  0x51   :  { %656 = vmatmul.bf16.vlgmr.msrb.gmra.mxu2 %v816_v12 }
  0xac   :  { %v573_v18 = vpop.f32.mrf.mxu0 }
  0xad   :  { %v587_v20 = vpop.f32.mrf.mxu1  ;;  %v574_v26 = vadd.f32 %v1154_v23, %v573_v18 }
  0xaf   :  { %v588_v30 = vadd.f32 %v587_v20, %v574_v26 }
  0xb4   :  { %v601_v24 = vpop.f32.mrf.mxu2  ;;  %v575_v25 = vpop.f32.mrf.mxu0 }
  0xb5   :  { %v615_v27 = vpop.f32.mrf.mxu3  ;;  %v589_v28 = vpop.f32.mrf.mxu1  ;;  %v576_v29 = vadd.f32 %v1154_v23, %v575_v25  ;;  %v602_v34 = vadd.f32 %v601_v24, %v588_v30 }
  0xb7   :  { %v590_v32 = vadd.f32 %v589_v28, %v576_v29  ;;  %v616_v37 = vadd.f32 %v615_v27, %v602_v34 }
  0xbc   :  { %v603_v31 = vpop.f32.mrf.mxu2 }
  0xbd   :  { %v604_v36 = vadd.f32 %v603_v31, %v590_v32  ;;  %v617_v38 = vpop.f32.mrf.mxu3 }
  0xbf   :  { %v618_v41 = vadd.f32 %v617_v38, %v604_v36 }
  0xcc   :  { %v629_v33 = vpop.f32.mrf.mxu0 }
  0xcd   :  { %v643_v35 = vpop.f32.mrf.mxu1  ;;  %v630_v39 = vadd.f32 %v629_v33, %v616_v37 }
  0xcf   :  { %v644_v44 = vadd.f32 %v643_v35, %v630_v39 }
  0xd4   :  { %v657_v40 = vpop.f32.mrf.mxu2  ;;  %v631_v42 = vpop.f32.mrf.mxu0 }
  0xd5   :  { %v632_v43 = vadd.f32 %v631_v42, %v618_v41  ;;  %v658_v45 = vadd.f32 %v657_v40, %v644_v44  ;;  %v645_v46 = vpop.f32.mrf.mxu1 }
  0xd7   :  { %v646_v47 = vadd.f32 %v645_v46, %v632_v43  ;;  %1156 = vtanh.f32 %v658_v45 }
  0xdc   :  { %v659_v48 = vpop.f32.mrf.mxu2 }
  0xdd   :  { %v660_v49 = vadd.f32 %v659_v48, %v646_v47  ;;  %v1157_v50 = vpop.eup %1156 }
  0xdf   :  { %1158 = vtanh.f32 %v660_v49 }
  0xe5   :  { %v1159_v51 = vpop.eup %1158 }
  0xe6   :  { %v664_v52 = vpack.c.bf16 %v1159_v51, %v1157_v50 }
  0xe8   :  { %741 = vmatmul.bf16.vlgmr.msrb.gmra.mxu3 %v664_v52 }
 0x16b   :  { %v742_v54 = vpop.f32.mrf.mxu3 }
 0x16c   :  { %v743_v55 = vadd.f32 %v1155_v53, %v742_v54 }
 0x16e   :  { %747 = vmax.xlane.f32.xlu0 %v743_v55 }
 0x173   :  { %v744_v56 = vpop.f32.mrf.mxu3 }
 0x174   :  { %v745_v57 = vadd.f32 %v1155_v53, %v744_v56 }
 0x176   :  { %749 = vmax.xlane.f32.xlu0 %v745_v57 }
 0x1e1   :  { %v748_v58 = vpop.xlane.xlu0 %747 }
 0x1e2   :  { %v751_v59 = vsub.f32 %v743_v55, %v748_v58 }
 0x1e4   :  { %v753_v60 = vmul.f32 1.442695, %v751_v59 }
 0x1e6   :  { %1160 = vpow2.f32 %v753_v60 }
 0x1e9   :  { %v750_v61 = vpop.xlane.xlu0 %749 }
 0x1ea   :  { %v752_v62 = vsub.f32 %v745_v57, %v750_v61 }
 0x1ec   :  { %v1161_v63 = vpop.eup %1160  ;;  %v755_v0 = vmul.f32 1.442695, %v752_v62 }
 0x1ed   :  { %757 = vadd.xlane.f32.xlu1 %v1161_v63 }
 0x1ee   :  { %1162 = vpow2.f32 %v755_v0 }
 0x1f4   :  { %v1163_v1 = vpop.eup %1162 }
 0x1f5   :  { %759 = vadd.xlane.f32.xlu1 %v1163_v1 }
 0x260   :  { %v758_v2 = vpop.xlane.xlu1 %757 }
 0x261   :  { %1164 = vlog2.f32 %v758_v2 }
 0x267   :  { %v1165_v3 = vpop.eup %1164 }
 0x268   :  { %v762_v4 = vmul.f32 0.6931472, %v1165_v3  ;;  %v760_v5 = vpop.xlane.xlu1 %759 }
 0x269   :  { %1166 = vlog2.f32 %v760_v5 }
 0x26a   :  { %v765_v6 = vsub.f32 %v751_v59, %v762_v4 }
 0x26c   :  { %767 = vst [vmem:[#allocation8] sm:$0xff] %v765_v6 }
 0x26f   :  { %v1167_v7 = vpop.eup %1166 }
 0x270   :  { %v764_v8 = vmul.f32 0.6931472, %v1167_v7 }
 0x272   :  { %v766_v9 = vsub.f32 %v752_v62, %v764_v8 }
 0x274   :  { %768 = vst [vmem:[#allocation8 + $0x8] sm:$0xff] %v766_v9 }
 0x275   :  { %781 = dma.vmem_to_hbm [thread:$0]  %s774_s12, 256, %s776_s15, [#allocation4], %s1278_s16, %s1278_s16, %s1279_s17  }
 0x276   :  { %1268 = dma.done.wait [#allocation4], 256  }
 0x277   :  { %1269 = vsyncadd [#allocation4], 4294967040 }
 0x278   :  { %786 = vsyncpa [#allocation3], 1 }
 0x279   :  { %787 = vsyncpa [#allocation6], 1 }
 0x27a   :  { %788 = vsyncpa [#allocation4], 1 }

</bundles_post_ra>
